<compile_context>
chip_gen: v7x
topology: tpu7x:2x2x1
jax: 0.10.0
libtpu: 0.0.40
codegen_flags: <defaults>
</compile_context>

<pallas_src>
import jax
import jax.numpy as jnp
from jax.experimental import pallas as pl
from jax.experimental.pallas import tpu as pltpu


def _binary_activation_kernel(params_ref, x_ref, o_ref):
    # params (SMEM, f32): [beta, hi, lo, eq]
    x = x_ref[...]
    dt = x.dtype
    beta = params_ref[0].astype(dt)
    hi = params_ref[1].astype(dt)
    lo = params_ref[2].astype(dt)
    eq = params_ref[3].astype(dt)
    # 3-way select: 2 compares + 2 selects per element, all in the native dtype.
    o_ref[...] = jnp.where(x > beta, hi, jnp.where(x < beta, lo, eq))


def _pick_row_tile(rows, itemsize, target_block_bytes, lanes):
    """Rows per block: multiple of 32, ~target_block_bytes, >= 4 steps if possible."""
    if rows <= 32:
        return rows  # full-dim block (always layout-legal)
    cap = max(32, (target_block_bytes // (lanes * itemsize)) // 32 * 32)
    want = max(32, ((rows + 3) // 4) // 32 * 32)  # aim for >= 4 grid steps
    return min(cap, want)


def binary_activation(x, alpha_a, beta_a, *, target_block_bytes=4 << 20):
    """Elementwise AdaBin binarization. x: any shape/dtype; alpha_a/beta_a scalars."""
    orig_shape = x.shape
    dtype = x.dtype
    n = int(x.size)
    if n == 0:
        return x
    lanes = 128
    itemsize = jnp.dtype(dtype).itemsize

    # Fold the scalar math on the host side (alpha == 0 is degenerate in the
    # original module too: division by zero).
    alpha_f = jnp.asarray(alpha_a, jnp.float32)
    beta_f = jnp.asarray(beta_a, jnp.float32)
    abs_a = jnp.abs(alpha_f)
    ab = alpha_f * beta_f
    params = jnp.stack([beta_f, abs_a + ab, -abs_a + ab, ab])

    cost = pl.CostEstimate(
        flops=4 * n, transcendentals=0, bytes_accessed=2 * n * itemsize
    )
    cparams = pltpu.CompilerParams(
        dimension_semantics=("parallel",),
        vmem_limit_bytes=32 * 1024 * 1024,
    )

    if n % lanes == 0:
        # Copy-free lane-dense path (typical NCHW activations): reshape only.
        rows = n // lanes
        x2d = x.reshape(rows, lanes)
        tr = _pick_row_tile(rows, itemsize, target_block_bytes, lanes)
        out2d = pl.pallas_call(
            _binary_activation_kernel,
            out_shape=jax.ShapeDtypeStruct((rows, lanes), dtype),
            grid=(pl.cdiv(rows, tr),),
            in_specs=[
                pl.BlockSpec(memory_space=pltpu.SMEM),        # scalar params
                pl.BlockSpec((tr, lanes), lambda i: (i, 0)),  # x tile
            ],
            out_specs=pl.BlockSpec((tr, lanes), lambda i: (i, 0)),
            compiler_params=cparams,
            cost_estimate=cost,
        )(params, x2d)
        return out2d.reshape(orig_shape)

    # Ragged path: 1-D kernel, no whole-array pad/slice copies. Pallas masks
    # the partial last block on both the load and the store.
    flat = x.reshape(-1)
    blk_cap = max(1024, (target_block_bytes // itemsize) // 1024 * 1024)
    blk = n if n <= blk_cap else blk_cap
    out_flat = pl.pallas_call(
        _binary_activation_kernel,
        out_shape=jax.ShapeDtypeStruct((n,), dtype),
        grid=(pl.cdiv(n, blk),),
        in_specs=[
            pl.BlockSpec(memory_space=pltpu.SMEM),
            pl.BlockSpec((blk,), lambda i: (i,)),
        ],
        out_specs=pl.BlockSpec((blk,), lambda i: (i,)),
        compiler_params=cparams,
        cost_estimate=cost,
    )(params, flat)
    return out_flat.reshape(orig_shape)


def binary_activation_ref(x, alpha_a, beta_a):
    xs = (x - beta_a) / alpha_a
    return alpha_a * (jnp.sign(xs) + beta_a)


if __name__ == "__main__":
    key = jax.random.PRNGKey(0)
    # Deterministic parameter init (matches nn.Parameter(torch.tensor(1.0)/0.0)).
    alpha_a = 1.0
    beta_a = 0.0
    # TODO(synk): noise>0 path (torch.rand_like perturbation) and the Bi-Real
    # gradient_approx backward (needs jax.custom_vjp) are not implemented;
    # with noise=0.0 the forward value is exactly the sign path below.

    # Main case: NCHW f32, size multiple of 128 -> copy-free lane-dense path.
    x = jax.random.normal(key, (2, 4, 16, 16), dtype=jnp.float32)
    out = binary_activation(x, alpha_a, beta_a)
    jax.block_until_ready(out)
    ref = binary_activation_ref(x, alpha_a, beta_a)
    assert out.shape == x.shape and out.dtype == x.dtype
    assert jnp.allclose(out, ref, atol=1e-6), "mismatch vs reference (f32)"

    # Medium aligned case: exercises the multi-step (>=4 blocks) grid path.
    xm = jax.random.normal(jax.random.PRNGKey(3), (2, 64, 32, 32), dtype=jnp.float32)
    outm = binary_activation(xm, 0.5, -0.1)
    jax.block_until_ready(outm)
    refm = binary_activation_ref(xm, 0.5, -0.1)
    assert jnp.allclose(outm, refm, atol=1e-6), "mismatch vs reference (multi-block)"

    # Ragged size + non-trivial alpha/beta: exercises the 1-D no-pad path.
    x2 = jax.random.normal(jax.random.PRNGKey(1), (2, 3, 7, 5), dtype=jnp.float32)
    out2 = binary_activation(x2, 0.75, 0.25)
    jax.block_until_ready(out2)
    ref2 = binary_activation_ref(x2, 0.75, 0.25)
    assert out2.shape == x2.shape and out2.dtype == x2.dtype
    assert jnp.allclose(out2, ref2, atol=1e-6), "mismatch vs reference (ragged)"

    # bf16 passthrough: native bf16 compute in-kernel, no f32 HBM round-trip.
    x3 = jax.random.normal(jax.random.PRNGKey(2), (2, 4, 16, 16), dtype=jnp.bfloat16)
    out3 = binary_activation(x3, 1.0, 0.0)
    jax.block_until_ready(out3)
    ref3 = binary_activation_ref(x3.astype(jnp.float32), 1.0, 0.0)
    assert out3.dtype == jnp.bfloat16 and out3.shape == x3.shape
    assert jnp.allclose(out3.astype(jnp.float32), ref3, atol=1e-2), "mismatch (bf16)"

    print("KERNEL_OK")
</pallas_src>

<mosaic_0001>
module attributes {stable_mosaic.version = 11 : i64} {
  func.func @_binary_activation_kernel(%arg0: i32, %arg1: memref<4xf32, #tpu.memory_space<smem>>, %arg2: memref<16x128xf32, #tpu.memory_space<vmem>>, %arg3: memref<16x128xf32, #tpu.memory_space<vmem>>) attributes {dimension_semantics = [#tpu.dimension_semantics<parallel>], iteration_bounds = array<i64: 1>, scalar_prefetch = 0 : i64, scratch_operands = 0 : i64, tpu.core_type = #tpu.core_type<tc>, window_params = [{transform_indices = @transform_0, window_bounds = array<i64: 4>}, {transform_indices = @transform_1, window_bounds = array<i64: 16, 128>}, {transform_indices = @transform_2, window_bounds = array<i64: 16, 128>}]} {
    %c0 = arith.constant 0 : index
    %c0_0 = arith.constant 0 : index
    %0 = vector.load %arg2[%c0, %c0_0] : memref<16x128xf32, #tpu.memory_space<vmem>>, vector<16x128xf32>
    %c0_1 = arith.constant 0 : index
    %1 = memref.load %arg1[%c0_1] : memref<4xf32, #tpu.memory_space<smem>>
    %c1 = arith.constant 1 : index
    %2 = memref.load %arg1[%c1] : memref<4xf32, #tpu.memory_space<smem>>
    %c2 = arith.constant 2 : index
    %3 = memref.load %arg1[%c2] : memref<4xf32, #tpu.memory_space<smem>>
    %c3 = arith.constant 3 : index
    %4 = memref.load %arg1[%c3] : memref<4xf32, #tpu.memory_space<smem>>
    %5 = vector.broadcast %1 : f32 to vector<16x128xf32>
    %6 = arith.cmpf ogt, %0, %5 : vector<16x128xf32>
    %7 = vector.broadcast %1 : f32 to vector<16x128xf32>
    %8 = arith.cmpf olt, %0, %7 : vector<16x128xf32>
    %9 = vector.broadcast %3 : f32 to vector<16x128xf32>
    %10 = vector.broadcast %4 : f32 to vector<16x128xf32>
    %11 = arith.select %8, %9, %10 : vector<16x128xi1>, vector<16x128xf32>
    %12 = vector.broadcast %2 : f32 to vector<16x128xf32>
    %13 = arith.select %6, %12, %11 : vector<16x128xi1>, vector<16x128xf32>
    %c0_2 = arith.constant 0 : index
    %c0_3 = arith.constant 0 : index
    %14 = vector.load %arg3[%c0_2, %c0_3] : memref<16x128xf32, #tpu.memory_space<vmem>>, vector<16x128xf32>
    tpu.vector_store %arg3[%c0_2, %c0_3], %13 {strides = array<i32>} : memref<16x128xf32, #tpu.memory_space<vmem>>, vector<16x128xf32>,
    return
  }
  func.func @transform_0(%arg0: i32) -> i32 {
    %c0_i32 = arith.constant 0 : i32
    %c0_i32_0 = arith.constant 0 : i32
    return %c0_i32 : i32
  }
  func.func @transform_1(%arg0: i32) -> (i32, i32) {
    %c0_i32 = arith.constant 0 : i32
    %c0_i32_0 = arith.constant 0 : i32
    return %arg0, %c0_i32 : i32, i32
  }
  func.func @transform_2(%arg0: i32) -> (i32, i32) {
    %c0_i32 = arith.constant 0 : i32
    %c0_i32_0 = arith.constant 0 : i32
    return %arg0, %c0_i32 : i32, i32
  }
}

</mosaic_0001>

<bundles_post_ra>
// kernel: tpu_custom_call.1
= control target key start
LH: loop header
LB: loop body
LE: loop exit
PB: predicated region body
PF: predicated region fallthrough
CT: control target
= control target key end

     0   :  { %7 = vsyncpa [#allocation5], 0  ;;  %s205_s0 = inlined_call_operand.hbm [shape: f32[4], index: 0, kind: input, shape index: {}]   ;;  %s206_s1 = inlined_call_operand.hbm [shape: f32[16,128], index: 1, kind: input, shape index: {}]   ;;  %s207_s2 = inlined_call_operand.hbm [shape: f32[16,128], index: 2, kind: output, shape index: {}]  }
   0x1   :  { %8 = vsyncpa [#allocation3], 0 }
   0x2   :  { %9 = vsyncpa [#allocation4], 0  ;;  %s83_s11 = scalar_lea.hbm %s205_s0, 16 }
   0x3   :  { %p84_p0 = scmp.ne.s32.totalorder %s205_s0, %s83_s11  ;;  %p87_p1 = scmp.lt.u32.totalorder %s83_s11, %s205_s0 }
   0x5   :  { %p89_p2 = pnand %p87_p1, %p84_p0 }
   0x7   :  { %92 = shalt.err (!%p89_p2)
}
   0x8   :  { %s143_s16 = smov [#allocation2]   ;;  %s144_s19 = smov [#allocation6]  }
   0x9   :  { %17 = dma.hbm_to_smem %s205_s0, 16, %s143_s16, [#allocation5]  }
   0xa   :  { %s23_s20 = sshll.u32 %s144_s19, 4  ;;  %s93_s23 = scalar_lea.hbm %s206_s1, 256  ;;  %s24_s20 = int_to_ptr.vmem [resolvable:$true] %s23_s20 }
   0xb   :  { %p94_p3 = scmp.ne.s32.totalorder %s206_s1, %s93_s23  ;;  %p97_p4 = scmp.lt.u32.totalorder %s93_s23, %s206_s1 }
   0xd   :  { %p99_p5 = pnand %p97_p4, %p94_p3 }
   0xf   :  { %102 = shalt.err (!%p99_p5)
}
  0x10   :  { %s103_s28 = scalar_lea.vmem %s24_s20, 256  ;;  %p108_p7 = scmp.lt.s32.totalorder %s24_s20, %s24_s20 }
  0x11   :  { %p104_p6 = scmp.ne.s32.totalorder %s24_s20, %s103_s28  ;;  %p109_p8 = scmp.lt.s32.totalorder %s103_s28, %s103_s28 }
  0x13   :  { %p110_p9 = por %p109_p8, %p108_p7 }
  0x15   :  { %p111_p10 = pnand %p110_p9, %p104_p6 }
  0x17   :  { %114 = shalt.err (!%p111_p10)
}
  0x18   :  { %s145_s0 = smov 128   ;;  %s146_s29 = smov 8  }
  0x19   :  { %29 = dma.hbm_to_vmem [thread:$0]  %s206_s1, 256, %s24_s20, [#allocation3], %s145_s0, %s145_s0, %s146_s29  }
  0x1a   :  { %137 = dma.done.wait [#allocation5], 16  }
  0x1b   :  { %138 = vsyncadd [#allocation5], 4294967280 }
  0x1c   :  { %139 = dma.done.wait [#allocation3], 256  }
  0x1d   :  { %140 = vsyncadd [#allocation3], 4294967040 }
  0x1e   :  { %36 = sfence }
  0x1f   :  { %s39_s4 = sld [smem:[#allocation2]]  ;;  %s75_s5 = sld [smem:[#allocation2 + $0x1]]  ;;  %v37_v0 = vld [vmem:[#allocation6] sm:$0xff]  ;;  %v38_v1 = vld [vmem:[#allocation6 + $0x8] sm:$0xff] }
  0x20   :  { %s76_s6 = sld [smem:[#allocation2 + $0x2]]  ;;  %s77_s7 = sld [smem:[#allocation2 + $0x3]] }
  0x21   :  { %s147_s8 = smov [#allocation7]  }
  0x22   :  { %s62_s9 = sshll.u32 %s147_s8, 4  ;;  %s63_s9 = int_to_ptr.vmem [resolvable:$true] %s62_s9 }
  0x23   :  { %s115_s1 = scalar_lea.vmem %s63_s9, 256  ;;  %p120_p12 = scmp.lt.s32.totalorder %s63_s9, %s63_s9 }
  0x24   :  { %p116_p11 = scmp.ne.s32.totalorder %s63_s9, %s115_s1  ;;  %p121_p13 = scmp.lt.s32.totalorder %s115_s1, %s115_s1 }
  0x25   :  { %v43_v2 = vstv %s39_s4  ;;  %v52_v3 = vstv %s75_s5 }
  0x26   :  { %vm44_vm0 = vcmp.gt.f32.partialorder %v37_v0, %v43_v2  ;;  %vm46_vm1 = vcmp.lt.f32.partialorder %v37_v0, %v43_v2  ;;  %v48_v4 = vstv %s76_s6  ;;  %v49_v5 = vstv %s77_s7  ;;  %p122_p0 = por %p121_p13, %p120_p12 }
  0x27   :  { %v50_v6 = vsel %vm46_vm1, %v48_v4, %v49_v5  ;;  %vm45_vm2 = vcmp.gt.f32.partialorder %v38_v1, %v43_v2  ;;  %vm47_vm3 = vcmp.lt.f32.partialorder %v38_v1, %v43_v2 }
  0x28   :  { %v53_v7 = vsel %vm44_vm0, %v52_v3, %v50_v6  ;;  %v51_v8 = vsel %vm47_vm3, %v48_v4, %v49_v5  ;;  %p123_p1 = pnand %p122_p0, %p116_p11 }
  0x29   :  { %55 = vst [vmem:[#allocation7] sm:$0xff] %v53_v7  ;;  %v54_v9 = vsel %vm45_vm2, %v52_v3, %v51_v8 }
  0x2a   :  { %56 = vst [vmem:[#allocation7 + $0x8] sm:$0xff] %v54_v9 }
  0x2b   :  { %126 = shalt.err (!%p123_p1)
}
  0x2c   :  { %s127_s12 = scalar_lea.hbm %s207_s2, 256 }
  0x2d   :  { %p128_p2 = scmp.ne.s32.totalorder %s207_s2, %s127_s12  ;;  %p131_p3 = scmp.lt.u32.totalorder %s127_s12, %s207_s2 }
  0x2f   :  { %p133_p4 = pnand %p131_p3, %p128_p2 }
  0x31   :  { %136 = shalt.err (!%p133_p4)
}
  0x32   :  { %68 = dma.vmem_to_hbm [thread:$0]  %s63_s9, 256, %s207_s2, [#allocation4], %s145_s0, %s145_s0, %s146_s29  }
  0x33   :  { %141 = dma.done.wait [#allocation4], 256  }
  0x34   :  { %142 = vsyncadd [#allocation4], 4294967040 }
  0x35   :  { %72 = vsyncpa [#allocation3], 1 }
  0x36   :  { %73 = vsyncpa [#allocation4], 1 }
  0x37   :  { %74 = vsyncpa [#allocation5], 1 }

</bundles_post_ra>
